<compile_context>
chip_gen: v7x
topology: tpu7x:2x2x1
jax: 0.10.0
libtpu: 0.0.40
codegen_flags: <defaults>
</compile_context>

<pallas_src>
import jax
import jax.numpy as jnp
from jax.experimental import pallas as pl
from jax.experimental.pallas import tpu as pltpu


def _rnn_kernel(x_ref, wh_ref, uh_ref, bh_ref, wy_ref, by_ref,
                y_ref, h_out_ref, hall_ref):
    """x_ref: (T*Bp, I) time-major-flattened input (row = t*Bp + b).
       hall_ref: (T*Bp, H) VMEM scratch holding every hidden state."""
    Bp, H = h_out_ref.shape
    TBp = x_ref.shape[0]
    T = TBp // Bp

    # ---- hoisted input projection: one big matmul, bias added once --------
    z = (jnp.dot(x_ref[...], wh_ref[...], preferred_element_type=jnp.float32)
         + bh_ref[...])                                      # (T*Bp, H)

    u_h = uh_ref[...]                                        # (H, H), loaded once

    # ---- sequential recurrence (fully unrolled; T is small and static) ----
    h = jnp.zeros((Bp, H), jnp.float32)
    for t in range(T):
        h = jnp.tanh(z[t * Bp:(t + 1) * Bp, :]
                     + jnp.dot(h, u_h, preferred_element_type=jnp.float32))
        hall_ref[t * Bp:(t + 1) * Bp, :] = h                 # aligned 8-row store

    # ---- hoisted output projection over all timesteps at once -------------
    pre_y = (jnp.dot(hall_ref[...], wy_ref[...],
                     preferred_element_type=jnp.float32)
             + by_ref[...])                                  # (T*Bp, O)
    y_ref[...] = jnp.where(pre_y >= 0, pre_y, 0.01 * pre_y).astype(y_ref.dtype)

    # final hidden state, stored exactly once
    h_out_ref[...] = h.astype(h_out_ref.dtype)


def my_rnn_forward(x, w_h, u_h, b_h, w_y, b_y):
    """x: (B, T, I) float32. Returns (h_T (B, H), y (B, T, O))."""
    B, T, I = x.shape
    H = u_h.shape[0]
    O = w_y.shape[1]

    # Pad batch up to the 8-row sublane granule so all in-kernel slices/stores
    # are tile aligned. Padded rows are independent and never touch real rows.
    Bp = max(8, ((B + 7) // 8) * 8)
    x_p = jnp.pad(x, ((0, Bp - B), (0, 0), (0, 0)))

    # Layout plumbing stays in the wrapper: time-major flatten (row = t*Bp + b).
    x_flat = jnp.transpose(x_p, (1, 0, 2)).reshape(T * Bp, I)
    bh2 = b_h.reshape(1, H)
    by2 = b_y.reshape(1, O)

    vmem = pl.BlockSpec(memory_space=pltpu.MemorySpace.VMEM)
    y_flat, h_T = pl.pallas_call(
        _rnn_kernel,
        out_shape=(jax.ShapeDtypeStruct((T * Bp, O), jnp.float32),
                   jax.ShapeDtypeStruct((Bp, H), jnp.float32)),
        in_specs=[vmem] * 6,
        out_specs=(vmem, vmem),
        scratch_shapes=[pltpu.VMEM((T * Bp, H), jnp.float32)],
        # TODO(synk): for large H, cast weights to bf16 (fp32 accumulate) and
        # raise vmem_limit_bytes / tile the H contraction so U_h stays resident
        # on v7x's 64 MiB VMEM.
    )(x_flat, w_h, u_h, bh2, w_y, by2)

    y = jnp.transpose(y_flat.reshape(T, Bp, O), (1, 0, 2))[:B]   # (B, T, O)
    return h_T[:B], y


def _xavier_uniform(key, shape):
    fan_in, fan_out = shape
    bound = jnp.sqrt(6.0 / (fan_in + fan_out))
    return jax.random.uniform(key, shape, jnp.float32, -bound, bound)


def _reference(x, w_h, u_h, b_h, w_y, b_y):
    B, T, I = x.shape
    H = u_h.shape[0]
    h = jnp.zeros((B, H), jnp.float32)
    ys = []
    for i in range(T):
        h = jnp.tanh(x[:, i, :] @ w_h + h @ u_h + b_h)
        pre_y = h @ w_y + b_y
        ys.append(jnp.where(pre_y >= 0, pre_y, 0.01 * pre_y))
    return h, jnp.stack(ys, axis=1)


if __name__ == "__main__":
    # module config: input_size=4, hidden_size=32, output_size=4
    B, T, I, H, O = 2, 8, 4, 32, 4

    key = jax.random.PRNGKey(0)
    k_x, k_wh, k_uh, k_wy = jax.random.split(key, 4)

    x = jax.random.normal(k_x, (B, T, I), jnp.float32)
    w_h = _xavier_uniform(k_wh, (I, H))
    u_h = _xavier_uniform(k_uh, (H, H))
    b_h = jnp.zeros((H,), jnp.float32)
    w_y = _xavier_uniform(k_wy, (H, O))
    b_y = jnp.zeros((O,), jnp.float32)

    h_T, y = jax.block_until_ready(my_rnn_forward(x, w_h, u_h, b_h, w_y, b_y))

    h_exp, y_exp = _reference(x, w_h, u_h, b_h, w_y, b_y)
    assert h_T.shape == (B, H) and y.shape == (B, T, O)
    assert jnp.allclose(h_T, h_exp, atol=1e-5, rtol=1e-5)
    assert jnp.allclose(y, y_exp, atol=1e-5, rtol=1e-5)

    print("KERNEL_OK")
</pallas_src>

<mosaic_0001>
module attributes {stable_mosaic.version = 11 : i64} {
  func.func @_rnn_kernel(%arg0: memref<64x4xf32, #tpu.memory_space<vmem>>, %arg1: memref<4x32xf32, #tpu.memory_space<vmem>>, %arg2: memref<32x32xf32, #tpu.memory_space<vmem>>, %arg3: memref<1x32xf32, #tpu.memory_space<vmem>>, %arg4: memref<32x4xf32, #tpu.memory_space<vmem>>, %arg5: memref<1x4xf32, #tpu.memory_space<vmem>>, %arg6: memref<64x4xf32, #tpu.memory_space<vmem>>, %arg7: memref<8x32xf32, #tpu.memory_space<vmem>>, %arg8: memref<64x32xf32, #tpu.memory_space<vmem>>) attributes {dimension_semantics = [], scalar_prefetch = 0 : i64, scratch_operands = 1 : i64, tpu.core_type = #tpu.core_type<tc>} {
    %c0 = arith.constant 0 : index
    %c0_0 = arith.constant 0 : index
    %0 = vector.load %arg0[%c0, %c0_0] : memref<64x4xf32, #tpu.memory_space<vmem>>, vector<64x4xf32>
    %c0_1 = arith.constant 0 : index
    %c0_2 = arith.constant 0 : index
    %1 = vector.load %arg1[%c0_1, %c0_2] : memref<4x32xf32, #tpu.memory_space<vmem>>, vector<4x32xf32>
    %cst = arith.constant dense<0.000000e+00> : vector<64x32xf32>
    %2 = tpu.matmul %0, %1, %cst {dimension_numbers = #tpu.dot_dimension_numbers<[1], [0], [0], [1], [0, 0, 1, 1], [], []>} : vector<64x4xf32>, vector<4x32xf32>, vector<64x32xf32> -> vector<64x32xf32>
    %c0_3 = arith.constant 0 : index
    %c0_4 = arith.constant 0 : index
    %3 = vector.load %arg3[%c0_3, %c0_4] : memref<1x32xf32, #tpu.memory_space<vmem>>, vector<1x32xf32>
    %4 = vector.broadcast %3 : vector<1x32xf32> to vector<64x32xf32>
    %5 = arith.addf %2, %4 : vector<64x32xf32>
    %c0_5 = arith.constant 0 : index
    %c0_6 = arith.constant 0 : index
    %6 = vector.load %arg2[%c0_5, %c0_6] : memref<32x32xf32, #tpu.memory_space<vmem>>, vector<32x32xf32>
    %cst_7 = arith.constant 0.000000e+00 : f32
    %7 = vector.broadcast %cst_7 : f32 to vector<8x32xf32>
    %8 = vector.extract_strided_slice %5 {offsets = [0, 0], sizes = [8, 32], strides = [1, 1]} : vector<64x32xf32> to vector<8x32xf32>
    %cst_8 = arith.constant dense<0.000000e+00> : vector<8x32xf32>
    %9 = tpu.matmul %7, %6, %cst_8 {dimension_numbers = #tpu.dot_dimension_numbers<[1], [0], [0], [1], [0, 0, 1, 1], [], []>} : vector<8x32xf32>, vector<32x32xf32>, vector<8x32xf32> -> vector<8x32xf32>
    %10 = arith.addf %8, %9 : vector<8x32xf32>
    %11 = math.tanh %10 : vector<8x32xf32>
    %c0_9 = arith.constant 0 : index
    %c0_10 = arith.constant 0 : index
    %12 = vector.load %arg8[%c0_9, %c0_10] : memref<64x32xf32, #tpu.memory_space<vmem>>, vector<8x32xf32>
    tpu.vector_store %arg8[%c0_9, %c0_10], %11 {strides = array<i32>} : memref<64x32xf32, #tpu.memory_space<vmem>>, vector<8x32xf32>,
    %13 = vector.extract_strided_slice %5 {offsets = [8, 0], sizes = [8, 32], strides = [1, 1]} : vector<64x32xf32> to vector<8x32xf32>
    %cst_11 = arith.constant dense<0.000000e+00> : vector<8x32xf32>
    %14 = tpu.matmul %11, %6, %cst_11 {dimension_numbers = #tpu.dot_dimension_numbers<[1], [0], [0], [1], [0, 0, 1, 1], [], []>} : vector<8x32xf32>, vector<32x32xf32>, vector<8x32xf32> -> vector<8x32xf32>
    %15 = arith.addf %13, %14 : vector<8x32xf32>
    %16 = math.tanh %15 : vector<8x32xf32>
    %c8 = arith.constant 8 : index
    %c0_12 = arith.constant 0 : index
    %17 = vector.load %arg8[%c8, %c0_12] : memref<64x32xf32, #tpu.memory_space<vmem>>, vector<8x32xf32>
    tpu.vector_store %arg8[%c8, %c0_12], %16 {strides = array<i32>} : memref<64x32xf32, #tpu.memory_space<vmem>>, vector<8x32xf32>,
    %18 = vector.extract_strided_slice %5 {offsets = [16, 0], sizes = [8, 32], strides = [1, 1]} : vector<64x32xf32> to vector<8x32xf32>
    %cst_13 = arith.constant dense<0.000000e+00> : vector<8x32xf32>
    %19 = tpu.matmul %16, %6, %cst_13 {dimension_numbers = #tpu.dot_dimension_numbers<[1], [0], [0], [1], [0, 0, 1, 1], [], []>} : vector<8x32xf32>, vector<32x32xf32>, vector<8x32xf32> -> vector<8x32xf32>
    %20 = arith.addf %18, %19 : vector<8x32xf32>
    %21 = math.tanh %20 : vector<8x32xf32>
    %c16 = arith.constant 16 : index
    %c0_14 = arith.constant 0 : index
    %22 = vector.load %arg8[%c16, %c0_14] : memref<64x32xf32, #tpu.memory_space<vmem>>, vector<8x32xf32>
    tpu.vector_store %arg8[%c16, %c0_14], %21 {strides = array<i32>} : memref<64x32xf32, #tpu.memory_space<vmem>>, vector<8x32xf32>,
    %23 = vector.extract_strided_slice %5 {offsets = [24, 0], sizes = [8, 32], strides = [1, 1]} : vector<64x32xf32> to vector<8x32xf32>
    %cst_15 = arith.constant dense<0.000000e+00> : vector<8x32xf32>
    %24 = tpu.matmul %21, %6, %cst_15 {dimension_numbers = #tpu.dot_dimension_numbers<[1], [0], [0], [1], [0, 0, 1, 1], [], []>} : vector<8x32xf32>, vector<32x32xf32>, vector<8x32xf32> -> vector<8x32xf32>
    %25 = arith.addf %23, %24 : vector<8x32xf32>
    %26 = math.tanh %25 : vector<8x32xf32>
    %c24 = arith.constant 24 : index
    %c0_16 = arith.constant 0 : index
    %27 = vector.load %arg8[%c24, %c0_16] : memref<64x32xf32, #tpu.memory_space<vmem>>, vector<8x32xf32>
    tpu.vector_store %arg8[%c24, %c0_16], %26 {strides = array<i32>} : memref<64x32xf32, #tpu.memory_space<vmem>>, vector<8x32xf32>,
    %28 = vector.extract_strided_slice %5 {offsets = [32, 0], sizes = [8, 32], strides = [1, 1]} : vector<64x32xf32> to vector<8x32xf32>
    %cst_17 = arith.constant dense<0.000000e+00> : vector<8x32xf32>
    %29 = tpu.matmul %26, %6, %cst_17 {dimension_numbers = #tpu.dot_dimension_numbers<[1], [0], [0], [1], [0, 0, 1, 1], [], []>} : vector<8x32xf32>, vector<32x32xf32>, vector<8x32xf32> -> vector<8x32xf32>
    %30 = arith.addf %28, %29 : vector<8x32xf32>
    %31 = math.tanh %30 : vector<8x32xf32>
    %c32 = arith.constant 32 : index
    %c0_18 = arith.constant 0 : index
    %32 = vector.load %arg8[%c32, %c0_18] : memref<64x32xf32, #tpu.memory_space<vmem>>, vector<8x32xf32>
    tpu.vector_store %arg8[%c32, %c0_18], %31 {strides = array<i32>} : memref<64x32xf32, #tpu.memory_space<vmem>>, vector<8x32xf32>,
    %33 = vector.extract_strided_slice %5 {offsets = [40, 0], sizes = [8, 32], strides = [1, 1]} : vector<64x32xf32> to vector<8x32xf32>
    %cst_19 = arith.constant dense<0.000000e+00> : vector<8x32xf32>
    %34 = tpu.matmul %31, %6, %cst_19 {dimension_numbers = #tpu.dot_dimension_numbers<[1], [0], [0], [1], [0, 0, 1, 1], [], []>} : vector<8x32xf32>, vector<32x32xf32>, vector<8x32xf32> -> vector<8x32xf32>
    %35 = arith.addf %33, %34 : vector<8x32xf32>
    %36 = math.tanh %35 : vector<8x32xf32>
    %c40 = arith.constant 40 : index
    %c0_20 = arith.constant 0 : index
    %37 = vector.load %arg8[%c40, %c0_20] : memref<64x32xf32, #tpu.memory_space<vmem>>, vector<8x32xf32>
    tpu.vector_store %arg8[%c40, %c0_20], %36 {strides = array<i32>} : memref<64x32xf32, #tpu.memory_space<vmem>>, vector<8x32xf32>,
    %38 = vector.extract_strided_slice %5 {offsets = [48, 0], sizes = [8, 32], strides = [1, 1]} : vector<64x32xf32> to vector<8x32xf32>
    %cst_21 = arith.constant dense<0.000000e+00> : vector<8x32xf32>
    %39 = tpu.matmul %36, %6, %cst_21 {dimension_numbers = #tpu.dot_dimension_numbers<[1], [0], [0], [1], [0, 0, 1, 1], [], []>} : vector<8x32xf32>, vector<32x32xf32>, vector<8x32xf32> -> vector<8x32xf32>
    %40 = arith.addf %38, %39 : vector<8x32xf32>
    %41 = math.tanh %40 : vector<8x32xf32>
    %c48 = arith.constant 48 : index
    %c0_22 = arith.constant 0 : index
    %42 = vector.load %arg8[%c48, %c0_22] : memref<64x32xf32, #tpu.memory_space<vmem>>, vector<8x32xf32>
    tpu.vector_store %arg8[%c48, %c0_22], %41 {strides = array<i32>} : memref<64x32xf32, #tpu.memory_space<vmem>>, vector<8x32xf32>,
    %43 = vector.extract_strided_slice %5 {offsets = [56, 0], sizes = [8, 32], strides = [1, 1]} : vector<64x32xf32> to vector<8x32xf32>
    %cst_23 = arith.constant dense<0.000000e+00> : vector<8x32xf32>
    %44 = tpu.matmul %41, %6, %cst_23 {dimension_numbers = #tpu.dot_dimension_numbers<[1], [0], [0], [1], [0, 0, 1, 1], [], []>} : vector<8x32xf32>, vector<32x32xf32>, vector<8x32xf32> -> vector<8x32xf32>
    %45 = arith.addf %43, %44 : vector<8x32xf32>
    %46 = math.tanh %45 : vector<8x32xf32>
    %c56 = arith.constant 56 : index
    %c0_24 = arith.constant 0 : index
    %47 = vector.load %arg8[%c56, %c0_24] : memref<64x32xf32, #tpu.memory_space<vmem>>, vector<8x32xf32>
    tpu.vector_store %arg8[%c56, %c0_24], %46 {strides = array<i32>} : memref<64x32xf32, #tpu.memory_space<vmem>>, vector<8x32xf32>,
    %c0_25 = arith.constant 0 : index
    %c0_26 = arith.constant 0 : index
    %48 = vector.load %arg8[%c0_25, %c0_26] : memref<64x32xf32, #tpu.memory_space<vmem>>, vector<64x32xf32>
    %c0_27 = arith.constant 0 : index
    %c0_28 = arith.constant 0 : index
    %49 = vector.load %arg4[%c0_27, %c0_28] : memref<32x4xf32, #tpu.memory_space<vmem>>, vector<32x4xf32>
    %cst_29 = arith.constant dense<0.000000e+00> : vector<64x4xf32>
    %50 = tpu.matmul %48, %49, %cst_29 {dimension_numbers = #tpu.dot_dimension_numbers<[1], [0], [0], [1], [0, 0, 1, 1], [], []>} : vector<64x32xf32>, vector<32x4xf32>, vector<64x4xf32> -> vector<64x4xf32>
    %c0_30 = arith.constant 0 : index
    %c0_31 = arith.constant 0 : index
    %51 = vector.load %arg5[%c0_30, %c0_31] : memref<1x4xf32, #tpu.memory_space<vmem>>, vector<1x4xf32>
    %52 = vector.broadcast %51 : vector<1x4xf32> to vector<64x4xf32>
    %53 = arith.addf %50, %52 : vector<64x4xf32>
    %cst_32 = arith.constant 0.000000e+00 : f32
    %54 = vector.broadcast %cst_32 : f32 to vector<64x4xf32>
    %55 = arith.cmpf oge, %53, %54 : vector<64x4xf32>
    %cst_33 = arith.constant 0.00999999977 : f32
    %56 = vector.broadcast %cst_33 : f32 to vector<64x4xf32>
    %57 = arith.mulf %56, %53 : vector<64x4xf32>
    %58 = arith.select %55, %53, %57 : vector<64x4xi1>, vector<64x4xf32>
    %c0_34 = arith.constant 0 : index
    %c0_35 = arith.constant 0 : index
    %59 = vector.load %arg6[%c0_34, %c0_35] : memref<64x4xf32, #tpu.memory_space<vmem>>, vector<64x4xf32>
    tpu.vector_store %arg6[%c0_34, %c0_35], %58 {strides = array<i32>} : memref<64x4xf32, #tpu.memory_space<vmem>>, vector<64x4xf32>,
    %c0_36 = arith.constant 0 : index
    %c0_37 = arith.constant 0 : index
    %60 = vector.load %arg7[%c0_36, %c0_37] : memref<8x32xf32, #tpu.memory_space<vmem>>, vector<8x32xf32>
    tpu.vector_store %arg7[%c0_36, %c0_37], %46 {strides = array<i32>} : memref<8x32xf32, #tpu.memory_space<vmem>>, vector<8x32xf32>,
    return
  }
}

</mosaic_0001>

<bundles_post_ra>
// kernel: tpu_custom_call.1
= control target key start
LH: loop header
LB: loop body
LE: loop exit
PB: predicated region body
PF: predicated region fallthrough
CT: control target
= control target key end

     0   :  { %vm67_vm0 = vcmask 1043456   ;;  %vm42_vm1 = vcmask 31744   ;;  %v1299_v8 = vmov 0.0|0.0   ;;  %s1565_s0 = inlined_call_operand.vmem [shape: f32[64,4], index: 0, kind: input, shape index: {}]   ;;  %s1566_s1 = inlined_call_operand.vmem [shape: f32[4,32], index: 1, kind: input, shape index: {}]   ;;  %s1567_s2 = inlined_call_operand.vmem [shape: f32[32,32], index: 2, kind: input, shape index: {}]   ;;  %s1568_s3 = inlined_call_operand.vmem [shape: f32[1,32], index: 3, kind: input, shape index: {}]   ;;  %s1569_s4 = inlined_call_operand.vmem [shape: f32[32,4], index: 4, kind: input, shape index: {}]   ;;  %s1570_s5 = inlined_call_operand.vmem [shape: f32[1,4], index: 5, kind: input, shape index: {}]   ;;  %s1571_s6 = inlined_call_operand.vmem [shape: f32[64,4], index: 6, kind: output, shape index: {0}]   ;;  %s1572_s7 = inlined_call_operand.hbm [shape: f32[8,32], index: 7, kind: output, shape index: {1}]  }
   0x1   :  { %v34_v0 = vld [vmem:[%s1566_s1] sm:$0xf]  ;;  %v31_v2 = vld [vmem:[%s1565_s0 + $0x28] sm:$0xff]  ;;  %v32_v5 = vld [vmem:[%s1565_s0 + $0x30] sm:$0xff] }
   0x2   :  { %v30_v1 = vld [vmem:[%s1565_s0 + $0x20] sm:$0xff]  ;;  %1253 = vmatprep.subr.msk.mxu1 %vm67_vm0, %v34_v0  ;;  %v177_v4 = vld [vmem:[%s1567_s2 + $0x8] sm:$0xff]  ;;  %1075 = vmatprep.subr.msk.mxu0 %vm67_vm0, %v34_v0  ;;  %v178_v10 = vld [vmem:[%s1567_s2 + $0x10] sm:$0xff] }
   0x3   :  { %1083 = vmatprep.mubr.msk.f32.mxu1 %vm42_vm1, %v30_v1  ;;  %v176_v3 = vld [vmem:[%s1567_s2] sm:$0xff]  ;;  %1254 = vmatpush3.msk.msra.mxu1 %vm67_vm0, %v34_v0  ;;  %v27_v9 = vld [vmem:[%s1565_s0 + $0x8] sm:$0xff]  ;;  %v179_v11 = vld [vmem:[%s1567_s2 + $0x18] sm:$0xff] }
   0x4   :  { %v1364_v6 = vpack.c.bf16 %v177_v4, %v176_v3  ;;  %v26_v7 = vld [vmem:[%s1565_s0] sm:$0xff]  ;;  %1084 = vmatmul.mubr.msk.f32.vlgmr.msra.gmra.mrb[0].mxu1 %vm42_vm1, %v31_v2  ;;  %1197 = vmatprep.subr.bf16.mxu1 %v1299_v8  ;;  %v33_v12 = vld [vmem:[%s1565_s0 + $0x38] sm:$0xff]  ;;  %v1386_v13 = vpack.c.bf16 %v179_v11, %v178_v10 }
   0x5   :  { %1086 = vmatprep.mubr.msk.f32.mxu1 %vm42_vm1, %v32_v5 }
   0x6   :  { %1199 = vmatpush3.bf16.msra.mxu1 %v1364_v6 }
   0x7   :  { %13 = vsyncpa [#allocation4], 0  ;;  %1076 = vmatpush3.msk.msra.mxu0 %vm67_vm0, %v34_v0  ;;  %1077 = vmatprep.mubr.msk.f32.mxu0 %vm42_vm1, %v26_v7  ;;  %vm1300_vm2 = vmmov 0   ;;  %v1301_v14 = vmov 0.0   ;;  %v1416_v18 = vld [vmem:[%s1568_s3] ss:$0 sm:$0xff] }
   0x8   :  { %1200 = vmatprep.subr.bf16.mxu1 %v1299_v8  ;;  %1078 = vmatmul.mubr.msk.f32.vlgmr.msra.gmra.mrb[0].mxu0 %vm42_vm1, %v27_v9  ;;  %vm180_vm3 = vcmask 261120   ;;  %v28_v27 = vld [vmem:[%s1565_s0 + $0x10] sm:$0xff]  ;;  %v29_v28 = vld [vmem:[%s1565_s0 + $0x18] sm:$0xff]  ;;  %v797_v51 = vld [vmem:[%s1569_s4] sm:$0xff]  ;;  %s1302_s21 = smov [#allocation3]  }
   0x9   :  { %1087 = vmatmul.mubr.msk.f32.gmra.mrb[2].mxu1 %vm42_vm1, %v33_v12  ;;  %1209 = vmatprep.subr.bf16.mxu0 %v1299_v8  ;;  %v798_v52 = vld [vmem:[%s1569_s4 + $0x8] sm:$0xff]  ;;  %v799_v58 = vld [vmem:[%s1569_s4 + $0x10] sm:$0xff]  ;;  %v800_v59 = vld [vmem:[%s1569_s4 + $0x18] sm:$0xff]  ;;  %s978_s2 = sshll.u32 %s1302_s21, 4  ;;  %s979_s2 = int_to_ptr.vmem [resolvable:$true] %s978_s2 }
   0xa   :  { %1202 = vmatpush3.bf16.msra.mxu1 %v1386_v13  ;;  %1097 = vmatprep.mubr.msk.f32.mxu1 %vm1300_vm2, %v1301_v14  ;;  %v1245_v53 = vpack.c.bf16 %v798_v52, %v797_v51  ;;  %v1249_v60 = vpack.c.bf16 %v800_v59, %v799_v58  ;;  %s1275_s22 = scalar_lea.vmem %s979_s2, 128  ;;  %p1280_p1 = scmp.lt.s32.totalorder %s979_s2, %s979_s2 }
   0xb   :  { %1203 = vmatprep.subr.bf16.mxu1 %v1299_v8  ;;  %1211 = vmatpush3.bf16.msra.mxu0 %v1364_v6  ;;  %p1276_p0 = scmp.ne.s32.totalorder %s979_s2, %s1275_s22  ;;  %p1281_p2 = scmp.lt.s32.totalorder %s1275_s22, %s1275_s22 }
   0xc   :  { %1212 = vmatprep.subr.bf16.mxu0 %v1299_v8  ;;  %1080 = vmatprep.mubr.msk.f32.mxu0 %vm42_vm1, %v28_v27 }
   0xd   :  { %1098 = vmatmul.mubr.f32.vlgmr.msra.gmra.mrb[4].mxu1 %v1301_v14  ;;  %1081 = vmatmul.mubr.msk.f32.gmra.mrb[2].mxu0 %vm42_vm1, %v29_v28  ;;  %p1282_p3 = por %p1281_p2, %p1280_p1 }
   0xe   :  { %1205 = vmatpush3.bf16.msra.mxu1 %v1364_v6  ;;  %1108 = vmatprep.mubr.msk.f32.mxu1 %vm1300_vm2, %v1301_v14 }
   0xf   :  { %1206 = vmatprep.subr.bf16.mxu1 %v1299_v8  ;;  %1214 = vmatpush3.bf16.msra.mxu0 %v1386_v13  ;;  %p1283_p4 = pnand %p1282_p3, %p1276_p0 }
  0x10   :  { %1221 = vmatprep.subr.bf16.mxu0 %v1299_v8  ;;  %1119 = vmatprep.mubr.msk.f32.mxu0 %vm1300_vm2, %v1301_v14 }
  0x12   :  { %1208 = vmatpush3.bf16.msra.mxu1 %v1386_v13 }
  0x13   :  { %1215 = vmatprep.subr.bf16.mxu1 %v1299_v8 }
  0xd7   :  { %v1409_v15 = vpop.f32.mrb[0].mxu1 }
  0xd8   :  { %v1411_v16 = vpop.f32.mrb[1].mxu1  ;;  %v163_v54 = vadd.f32 %v1409_v15, %v1416_v18 }
  0xd9   :  { %v158_v46 = vadd.f32 %v1416_v18, %v1411_v16 }
  0xdb   :  { %v1079_v17 = vpop.f32.mrb[0].mxu0 }
  0xdc   :  { %v1418_v19 = vpop.f32.mrb[2].mxu1  ;;  %v137_v20 = vpop.f32.mrb[1].mxu0  ;;  %v143_v29 = vadd.f32 %v1079_v17, %v1416_v18 }
  0xdd   :  { %v1420_v21 = vpop.f32.mrb[3].mxu1  ;;  %v138_v22 = vadd.f32 %v1416_v18, %v137_v20 }
  0xde   :  { %v168_v4 = vadd.f32 %v1416_v18, %v1420_v21 }
  0xe0   :  { %v250_v23 = vpop.f32.mrb[4].mxu1  ;;  %v1082_v34 = vpop.f32.mrb[2].mxu0 }
  0xe1   :  { %v254_v24 = vadd.f32 %v250_v23, %v138_v22  ;;  %v1099_v25 = vpop.f32.mrb[5].mxu1  ;;  %v147_v35 = vpop.f32.mrb[3].mxu0  ;;  %v153_v41 = vadd.f32 %v1082_v34, %v1416_v18 }
  0xe2   :  { %v148_v36 = vadd.f32 %v1416_v18, %v147_v35 }
  0xe3   :  { %1259 = vtanh.f32 %v254_v24 }
  0xed   :  { %v1260_v26 = vpop.eup %1259 }
  0xee   :  { %256 = vst.msk [vmem:[#allocation2] sm:$0xff] %vm180_vm3, %v1260_v26  ;;  %1109 = vmatmul.mubr.msk.f32.vlgmr.msra.gmra.mrb[6].mxu1 %vm180_vm3, %v1260_v26 }
  0xef   :  { %1217 = vmatpush3.bf16.msra.mxu1 %v1364_v6  ;;  %1130 = vmatprep.mubr.msk.f32.mxu1 %vm1300_vm2, %v1301_v14 }
  0xf0   :  { %1218 = vmatprep.subr.bf16.mxu1 %v1299_v8 }
  0xf3   :  { %1220 = vmatpush3.bf16.msra.mxu1 %v1386_v13 }
  0xf4   :  { %1227 = vmatprep.subr.bf16.mxu1 %v1299_v8 }
  0xf5   :  { %v789_v62 = vld [vmem:[#allocation2] sm:$0xff] }
 0x1c1   :  { %v326_v30 = vpop.f32.mrb[6].mxu1 }
 0x1c2   :  { %v330_v31 = vadd.f32 %v326_v30, %v143_v29  ;;  %v1110_v32 = vpop.f32.mrb[7].mxu1 }
 0x1c4   :  { %1261 = vtanh.f32 %v330_v31 }
 0x1ce   :  { %v1262_v33 = vpop.eup %1261 }
 0x1cf   :  { %332 = vst.msk [vmem:[#allocation2 + $0x8] sm:$0xff] %vm180_vm3, %v1262_v33  ;;  %1120 = vmatmul.mubr.msk.f32.vlgmr.msra.gmra.mrb[4].mxu0 %vm180_vm3, %v1262_v33 }
 0x1d0   :  { %1223 = vmatpush3.bf16.msra.mxu0 %v1364_v6  ;;  %1141 = vmatprep.mubr.msk.f32.mxu0 %vm1300_vm2, %v1301_v14 }
 0x1d1   :  { %1224 = vmatprep.subr.bf16.mxu0 %v1299_v8 }
 0x1d4   :  { %1226 = vmatpush3.bf16.msra.mxu0 %v1386_v13 }
 0x1d5   :  { %1233 = vmatprep.subr.bf16.mxu0 %v1299_v8 }
 0x1d6   :  { %v790_v63 = vld [vmem:[#allocation2 + $0x8] sm:$0xff] }
 0x2a2   :  { %v402_v37 = vpop.f32.mrb[4].mxu0 }
 0x2a3   :  { %v406_v38 = vadd.f32 %v402_v37, %v148_v36  ;;  %v1121_v39 = vpop.f32.mrb[5].mxu0  ;;  %v173_v37 = vadd.f32 %v1418_v19, %v1416_v18 }
 0x2a5   :  { %1263 = vtanh.f32 %v406_v38 }
 0x2af   :  { %v1264_v40 = vpop.eup %1263 }
 0x2b0   :  { %408 = vst.msk [vmem:[#allocation2 + $0x10] sm:$0xff] %vm180_vm3, %v1264_v40  ;;  %1131 = vmatmul.mubr.msk.f32.vlgmr.msra.gmra.mrb[8].mxu1 %vm180_vm3, %v1264_v40 }
 0x2b1   :  { %1229 = vmatpush3.bf16.msra.mxu1 %v1364_v6  ;;  %1152 = vmatprep.mubr.msk.f32.mxu1 %vm1300_vm2, %v1301_v14 }
 0x2b2   :  { %1230 = vmatprep.subr.bf16.mxu1 %v1299_v8 }
 0x2b5   :  { %1232 = vmatpush3.bf16.msra.mxu1 %v1386_v13 }
 0x2b6   :  { %1239 = vmatprep.subr.bf16.mxu1 %v1299_v8 }
 0x2b7   :  { %v791_v0 = vld [vmem:[#allocation2 + $0x10] sm:$0xff] }
 0x383   :  { %v478_v42 = vpop.f32.mrb[8].mxu1 }
 0x384   :  { %v482_v43 = vadd.f32 %v478_v42, %v153_v41  ;;  %v1132_v44 = vpop.f32.mrb[9].mxu1 }
 0x386   :  { %1265 = vtanh.f32 %v482_v43 }
 0x390   :  { %v1266_v45 = vpop.eup %1265 }
 0x391   :  { %484 = vst.msk [vmem:[#allocation2 + $0x18] sm:$0xff] %vm180_vm3, %v1266_v45  ;;  %1142 = vmatmul.mubr.msk.f32.vlgmr.msra.gmra.mrb[6].mxu0 %vm180_vm3, %v1266_v45 }
 0x392   :  { %1235 = vmatpush3.bf16.msra.mxu0 %v1364_v6  ;;  %1163 = vmatprep.mubr.msk.f32.mxu0 %vm1300_vm2, %v1301_v14 }
 0x393   :  { %1236 = vmatprep.subr.bf16.mxu0 %v1299_v8 }
 0x396   :  { %1238 = vmatpush3.bf16.msra.mxu0 %v1386_v13 }
 0x397   :  { %1246 = vmatprep.subr.bf16.mxu0 %v1245_v53 }
 0x398   :  { %v792_v1 = vld [vmem:[#allocation2 + $0x18] sm:$0xff] }
 0x464   :  { %v554_v47 = vpop.f32.mrb[6].mxu0 }
 0x465   :  { %v558_v48 = vadd.f32 %v554_v47, %v158_v46  ;;  %v1143_v49 = vpop.f32.mrb[7].mxu0 }
 0x467   :  { %1267 = vtanh.f32 %v558_v48 }
 0x471   :  { %v1268_v50 = vpop.eup %1267 }
 0x472   :  { %560 = vst.msk [vmem:[#allocation2 + $0x20] sm:$0xff] %vm180_vm3, %v1268_v50  ;;  %1153 = vmatmul.mubr.msk.f32.vlgmr.msra.gmra.mrb[10].mxu1 %vm180_vm3, %v1268_v50 }
 0x473   :  { %1241 = vmatpush3.bf16.msra.mxu1 %v1364_v6  ;;  %1174 = vmatprep.mubr.msk.f32.mxu1 %vm1300_vm2, %v1301_v14 }
 0x474   :  { %1242 = vmatprep.subr.bf16.mxu1 %v1299_v8  ;;  %v1503_v8 = vld [vmem:[%s1570_s5] ss:$0 sm:$0xff] }
 0x477   :  { %1244 = vmatpush3.bf16.msra.mxu1 %v1386_v13 }
 0x479   :  { %v793_v2 = vld [vmem:[#allocation2 + $0x20] sm:$0xff] }
 0x545   :  { %v630_v55 = vpop.f32.mrb[10].mxu1 }
 0x546   :  { %v634_v56 = vadd.f32 %v630_v55, %v163_v54  ;;  %v1154_v57 = vpop.f32.mrb[11].mxu1 }
 0x548   :  { %1269 = vtanh.f32 %v634_v56 }
 0x552   :  { %v1270_v61 = vpop.eup %1269 }
 0x553   :  { %636 = vst.msk [vmem:[#allocation2 + $0x28] sm:$0xff] %vm180_vm3, %v1270_v61  ;;  %1164 = vmatmul.mubr.msk.f32.vlgmr.msra.gmra.mrb[8].mxu0 %vm180_vm3, %v1270_v61 }
 0x554   :  { %1248 = vmatpush3.bf16.msra.mxu0 %v1245_v53  ;;  %1185 = vmatprep.mubr.msk.f32.mxu0 %vm180_vm3, %v789_v62 }
 0x555   :  { %1250 = vmatprep.subr.bf16.mxu0 %v1249_v60 }
 0x558   :  { %1252 = vmatpush3.bf16.msra.mxu0 %v1249_v60 }
 0x55a   :  { %v794_v3 = vld [vmem:[#allocation2 + $0x28] sm:$0xff] }
 0x55b   :  { %1186 = vmatmul.mubr.msk.f32.vlgmr.msra.gmra.mrb[10].mxu0 %vm180_vm3, %v790_v63 }
 0x55c   :  { %1188 = vmatprep.mubr.msk.f32.mxu0 %vm180_vm3, %v791_v0 }
 0x55f   :  { %1189 = vmatmul.mubr.msk.f32.gmra.mrb[12].mxu0 %vm180_vm3, %v792_v1 }
 0x560   :  { %1191 = vmatprep.mubr.msk.f32.mxu0 %vm180_vm3, %v793_v2 }
 0x563   :  { %1192 = vmatmul.mubr.msk.f32.gmra.mrb[14].mxu0 %vm180_vm3, %v794_v3 }
 0x626   :  { %v706_v5 = vpop.f32.mrb[8].mxu0 }
 0x627   :  { %v710_v6 = vadd.f32 %v706_v5, %v168_v4  ;;  %v1165_v7 = vpop.f32.mrb[9].mxu0 }
 0x629   :  { %1271 = vtanh.f32 %v710_v6 }
 0x62e   :  { %v1187_v9 = vpop.f32.mrb[10].mxu0 }
 0x62f   :  { %v904_v10 = vadd.f32 %v1187_v9, %v1503_v8  ;;  %v898_v11 = vpop.f32.mrb[11].mxu0 }
 0x630   :  { %v899_v12 = vadd.f32 %v1503_v8, %v898_v11 }
 0x631   :  { %vm938_vm4 = vcmp.ge.f32.partialorder %v904_v10, 0.0  ;;  %v946_v13 = vmul.f32 0.01, %v904_v10 }
 0x632   :  { %vm937_vm5 = vcmp.ge.f32.partialorder %v899_v12, 0.0  ;;  %v945_v14 = vmul.f32 0.01, %v899_v12  ;;  %v1190_v15 = vpop.f32.mrb[12].mxu0 }
 0x633   :  { %v1272_v16 = vpop.eup %1271  ;;  %v954_v17 = vsel %vm938_vm4, %v904_v10, %v946_v13  ;;  %v914_v20 = vadd.f32 %v1190_v15, %v1503_v8  ;;  %v908_v21 = vpop.f32.mrb[13].mxu0 }
 0x634   :  { %712 = vst.msk [vmem:[#allocation2 + $0x30] sm:$0xff] %vm180_vm3, %v1272_v16  ;;  %v953_v22 = vsel %vm937_vm5, %v899_v12, %v945_v14  ;;  %v909_v23 = vadd.f32 %v1503_v8, %v908_v21  ;;  %1175 = vmatmul.mubr.msk.f32.vlgmr.msra.gmra.mrb[12].mxu1 %vm180_vm3, %v1272_v16 }
 0x635   :  { %962 = vst.msk [vmem:[%s1571_s6 + $0x8] sm:$0xff] %vm42_vm1, %v954_v17  ;;  %961 = vst.msk [vmem:[%s1571_s6] sm:$0xff] %vm42_vm1, %v953_v22  ;;  %vm940_vm6 = vcmp.ge.f32.partialorder %v914_v20, 0.0  ;;  %v948_v24 = vmul.f32 0.01, %v914_v20 }
 0x636   :  { %vm939_vm7 = vcmp.ge.f32.partialorder %v909_v23, 0.0  ;;  %v947_v25 = vmul.f32 0.01, %v909_v23  ;;  %v1193_v26 = vpop.f32.mrb[14].mxu0 }
 0x637   :  { %v956_v27 = vsel %vm940_vm6, %v914_v20, %v948_v24  ;;  %v924_v28 = vadd.f32 %v1193_v26, %v1503_v8  ;;  %v918_v29 = vpop.f32.mrb[15].mxu0 }
 0x638   :  { %964 = vst.msk [vmem:[%s1571_s6 + $0x18] sm:$0xff] %vm42_vm1, %v956_v27  ;;  %v955_v30 = vsel %vm939_vm7, %v909_v23, %v947_v25  ;;  %v919_v31 = vadd.f32 %v1503_v8, %v918_v29 }
 0x639   :  { %963 = vst.msk [vmem:[%s1571_s6 + $0x10] sm:$0xff] %vm42_vm1, %v955_v30  ;;  %vm942_vm8 = vcmp.ge.f32.partialorder %v924_v28, 0.0  ;;  %v950_v32 = vmul.f32 0.01, %v924_v28 }
 0x63a   :  { %vm941_vm9 = vcmp.ge.f32.partialorder %v919_v31, 0.0  ;;  %v949_v33 = vmul.f32 0.01, %v919_v31 }
 0x63b   :  { %v958_v34 = vsel %vm942_vm8, %v924_v28, %v950_v32  ;;  %v795_v35 = vld [vmem:[#allocation2 + $0x30] sm:$0xff] }
 0x63c   :  { %966 = vst.msk [vmem:[%s1571_s6 + $0x28] sm:$0xff] %vm42_vm1, %v958_v34  ;;  %v957_v36 = vsel %vm941_vm9, %v919_v31, %v949_v33  ;;  %1194 = vmatprep.mubr.msk.f32.mxu0 %vm180_vm3, %v795_v35 }
 0x63d   :  { %965 = vst.msk [vmem:[%s1571_s6 + $0x20] sm:$0xff] %vm42_vm1, %v957_v36 }
 0x707   :  { %v782_v38 = vpop.f32.mrb[12].mxu1 }
 0x708   :  { %v786_v39 = vadd.f32 %v782_v38, %v173_v37  ;;  %v1176_v40 = vpop.f32.mrb[13].mxu1 }
 0x70a   :  { %1273 = vtanh.f32 %v786_v39 }
 0x714   :  { %v1274_v41 = vpop.eup %1273 }
 0x715   :  { %788 = vst.msk [vmem:[#allocation2 + $0x38] sm:$0xff] %vm180_vm3, %v1274_v41  ;;  %969 = vst.msk [vmem:[#allocation3] sm:$0xff] %vm180_vm3, %v1274_v41 }
 0x71c   :  { %v796_v42 = vld [vmem:[#allocation2 + $0x38] sm:$0xff] }
 0x71d   :  { %1195 = vmatmul.mubr.msk.f32.gmra.mrb[16].mxu0 %vm180_vm3, %v796_v42 }
 0x71e   :  { %1286 = shalt.err (!%p1283_p4)
}
 0x71f   :  { %s1287_s24 = scalar_lea.hbm %s1572_s7, 128 }
 0x720   :  { %p1288_p5 = scmp.ne.s32.totalorder %s1572_s7, %s1287_s24  ;;  %p1291_p6 = scmp.lt.u32.totalorder %s1287_s24, %s1572_s7 }
 0x722   :  { %p1293_p7 = pnand %p1291_p6, %p1288_p5 }
 0x724   :  { %1296 = shalt.err (!%p1293_p7)
}
 0x725   :  { %981 = dma.vmem_to_hbm [thread:$0]  %s979_s2, 128, %s1572_s7, [#allocation4]  }
 0x7f0   :  { %v1196_v18 = vpop.f32.mrb[16].mxu0 }
 0x7f1   :  { %v934_v19 = vadd.f32 %v1196_v18, %v1503_v8  ;;  %v928_v43 = vpop.f32.mrb[17].mxu0 }
 0x7f2   :  { %v929_v44 = vadd.f32 %v1503_v8, %v928_v43 }
 0x7f3   :  { %vm944_vm10 = vcmp.ge.f32.partialorder %v934_v19, 0.0  ;;  %v952_v45 = vmul.f32 0.01, %v934_v19 }
 0x7f4   :  { %vm943_vm11 = vcmp.ge.f32.partialorder %v929_v44, 0.0  ;;  %v951_v46 = vmul.f32 0.01, %v929_v44 }
 0x7f5   :  { %v960_v47 = vsel %vm944_vm10, %v934_v19, %v952_v45 }
 0x7f6   :  { %968 = vst.msk [vmem:[%s1571_s6 + $0x38] sm:$0xff] %vm42_vm1, %v960_v47  ;;  %v959_v48 = vsel %vm943_vm11, %v929_v44, %v951_v46 }
 0x7f7   :  { %967 = vst.msk [vmem:[%s1571_s6 + $0x30] sm:$0xff] %vm42_vm1, %v959_v48 }
 0x7f8   :  { %1297 = dma.done.wait [#allocation4], 128  }
 0x7f9   :  { %1298 = vsyncadd [#allocation4], 4294967168 }
 0x7fa   :  { %987 = vsyncpa [#allocation4], 1 }

</bundles_post_ra>
